<compile_context>
chip_gen: v6e
topology: v6e:2x2x1
jax: 0.10.0
libtpu: 0.0.40
codegen_flags: <defaults>
</compile_context>

<pallas_src>
import functools

import jax
import jax.numpy as jnp
from jax.experimental import pallas as pl
from jax.experimental.pallas import tpu as pltpu


def _cdiv(a, b):
    return -(-a // b)


def _round_up(a, b):
    return _cdiv(a, b) * b


def _choose_tile(n, tile_n):
    """Lane-dense batch tile: multiple of 128, >=2 grid steps for n > 128,
    shrunk to minimize zero-padding."""
    n = max(int(n), 1)
    tile_n = max(_round_up(int(tile_n), 128), 128)
    if n <= 128:
        return 128
    # v7x megacore: keep at least 2 grid steps so both TensorCores get work.
    tile = min(tile_n, _round_up(_cdiv(n, 2), 128))
    # With that many tiles, shrink the tile to just cover n (less padding).
    n_tiles = _cdiv(n, tile)
    return _round_up(_cdiv(n, n_tiles), 128)


def _auto_bf16_tanh():
    """bf16 EUP tanh path exists on v6e/v7x; not on v5e / CPU interpret."""
    try:
        kind = jax.devices()[0].device_kind.lower()
    except Exception:
        return False
    return any(t in kind for t in ("v6", "v7", "trillium", "ironwood"))


def _uncertainty_kernel(x_ref, w1t_ref, at_ref, pack_ref, scal_ref, out_ref,
                        *, bf16_tanh):
    # x_ref   : (TN, D_in) f32   natural layout (no wrapper transpose)
    # w1t_ref : (F, D_in)  f32   W1^T
    # at_ref  : (F, F)     f32   A^T, A = inv_cov[:F, :F]
    # pack_ref: (F, 8)     f32   columns [b1 | w2 | v=col+row | 0...]
    # scal_ref: (2,)       f32   SMEM: [b2, corner = inv_cov[F, F]]
    # out_ref : (1, 2, TN) f32   rows [prediction, uncertainty]
    x = x_ref[...]
    pack = pack_ref[...]
    b1 = pack[:, 0:1]
    w2 = pack[:, 1:2]
    v = pack[:, 2:3]

    # Hidden features, feature-major (F, TN): one small-K MXU matmul; the
    # rhs-transposed contraction (q@k.T pattern) avoids any explicit x^T.
    pre = jax.lax.dot_general(
        w1t_ref[...], x,
        dimension_numbers=(((1,), (1,)), ((), ())),
        preferred_element_type=jnp.float32) + b1                        # (F, TN)

    if bf16_tanh:
        # v6e/v7x only: EUP bf16 tanh (~2x throughput); downstream stays f32.
        feat = jnp.tanh(pre.astype(jnp.bfloat16)).astype(jnp.float32)
    else:
        feat = jnp.tanh(pre)                                            # (F, TN)

    b2 = scal_ref[0]
    c = scal_ref[1]

    # Prediction (last linear layer): VPU multiply + XLU sublane reduce,
    # keeps the MXU free for the quadratic form.
    pred = jnp.sum(feat * w2, axis=0, keepdims=True) + b2               # (1, TN)

    # Quadratic-form uncertainty with the bias-column linear term fused into
    # the same reduction:  unc = sum_F feat * (A^T feat + v) + corner
    t = jnp.dot(at_ref[...], feat, preferred_element_type=jnp.float32)  # (F, TN)
    unc = jnp.sum(feat * (t + v), axis=0, keepdims=True) + c            # (1, TN)

    out_ref[...] = jnp.concatenate([pred, unc], axis=0)[None, :, :]     # (1,2,TN)


@functools.partial(jax.jit, static_argnames=("tile_n", "bf16_tanh"))
def uncertainty_forward(x, w1, b1, w2, b2, inv_cov, *, tile_n=4096,
                        bf16_tanh=False):
    """LLPR forward: returns (prediction (N, 1), uncertainty (N, 1))."""
    n, d_in = x.shape
    f = w1.shape[1]
    assert inv_cov.shape == (f + 1, f + 1)

    tile = _choose_tile(n, tile_n)
    n_pad = _round_up(n, tile)
    n_tiles = n_pad // tile

    # x stays in natural layout and f32 — only zero-pad the batch if needed.
    x_f = x.astype(jnp.float32)
    if n_pad != n:
        x_f = jnp.pad(x_f, ((0, n_pad - n), (0, 0)))

    w1t = w1.T.astype(jnp.float32)                                      # (F, D_in)
    # Exact fold of h_aug = [feat, 1] (no symmetry assumption on inv_cov):
    a_t = inv_cov[:f, :f].T.astype(jnp.float32)                         # A^T (F, F)
    v_col = (inv_cov[:f, f] + inv_cov[f, :f]).astype(jnp.float32)       # col + row
    pack = jnp.stack([b1.reshape(f).astype(jnp.float32),
                      w2.reshape(f).astype(jnp.float32),
                      v_col], axis=1)                                   # (F, 3)
    pack = jnp.pad(pack, ((0, 0), (0, 8 - pack.shape[1])))              # (F, 8)
    scal = jnp.stack([b2.reshape(()), inv_cov[f, f]]).astype(jnp.float32)

    flops = n_pad * (2 * d_in * f + 2 * f * f + 8 * f)
    bytes_accessed = (n_pad * d_in * 4 + 2 * n_pad * 4
                      + 4 * (d_in * f + f * f + 8 * f) + 8)

    kernel = functools.partial(_uncertainty_kernel, bf16_tanh=bf16_tanh)

    out = pl.pallas_call(
        kernel,
        grid=(n_tiles,),
        in_specs=[
            pl.BlockSpec((tile, d_in), lambda i: (i, 0)),        # x tile (streamed)
            pl.BlockSpec((f, d_in), lambda i: (0, 0)),           # W1^T (resident)
            pl.BlockSpec((f, f), lambda i: (0, 0)),              # A^T  (resident)
            pl.BlockSpec((f, 8), lambda i: (0, 0)),              # [b1|w2|v]
            pl.BlockSpec(memory_space=pltpu.MemorySpace.SMEM),   # [b2, corner]
        ],
        out_specs=pl.BlockSpec((1, 2, tile), lambda i: (i, 0, 0)),
        out_shape=jax.ShapeDtypeStruct((n_tiles, 2, tile), jnp.float32),
        compiler_params=pltpu.CompilerParams(
            dimension_semantics=("parallel",),
        ),
        cost_estimate=pl.CostEstimate(
            flops=int(flops),
            transcendentals=int(n_pad * f),
            bytes_accessed=int(bytes_accessed),
        ),
    )(x_f, w1t, a_t, pack, scal)
    # TODO(synk): for production-size F, add a K-tiled "arbitrary" grid axis
    # over A^T with an f32 accumulator and an explicit vmem_limit_bytes.

    pred = out[:, 0, :].reshape(-1)[:n, None]
    unc = out[:, 1, :].reshape(-1)[:n, None]
    return pred, unc


def _reference_forward(x, w1, b1, w2, b2, inv_cov):
    feat = jnp.tanh(x @ w1 + b1)
    pred = feat @ w2 + b2
    h_aug = jnp.concatenate([feat, jnp.ones_like(feat[:, :1])], axis=1)
    unc = jnp.einsum("ij,jk,ik->i", h_aug, inv_cov, h_aug)[:, None]
    return pred, unc


if __name__ == "__main__":
    # Small shapes consistent with the module: batch N=8 structures,
    # D_in=16 input descriptors, last-layer in_features F=32 -> hidden_size 33.
    N, D_IN, F = 8, 16, 32
    H = F + 1

    key = jax.random.PRNGKey(0)
    k_x, k_w1, k_b1, k_w2, k_b2, k_train = jax.random.split(key, 6)

    x = jax.random.normal(k_x, (N, D_IN), dtype=jnp.float32)
    w1 = jax.random.normal(k_w1, (D_IN, F), dtype=jnp.float32) * 0.2
    b1 = jax.random.normal(k_b1, (1, F), dtype=jnp.float32) * 0.1
    w2 = jax.random.normal(k_w2, (F, 1), dtype=jnp.float32) * 0.2
    b2 = jax.random.normal(k_b2, (1, 1), dtype=jnp.float32) * 0.1

    # TODO(synk): the PyTorch hook registration + train-loader covariance
    # accumulation and set_hyperparameters are host-side setup, reproduced in
    # plain JAX here (not part of the kernelized forward pass).
    x_train = jax.random.normal(k_train, (64, D_IN), dtype=jnp.float32)
    feat_train = jnp.tanh(x_train @ w1 + b1)
    h_train = jnp.concatenate(
        [feat_train, jnp.ones_like(feat_train[:, :1])], axis=1
    )
    covariance = h_train.T @ h_train
    C_hyper, sigma_hyper = 1.0, 1.0
    inv_cov = C_hyper * jnp.linalg.inv(
        covariance + sigma_hyper ** 2 * jnp.eye(H, dtype=jnp.float32)
    )

    use_bf16_tanh = _auto_bf16_tanh()   # v6e/v7x only; False on v5e / interpret
    pred, unc = uncertainty_forward(x, w1, b1, w2, b2, inv_cov,
                                    bf16_tanh=use_bf16_tanh)
    jax.block_until_ready((pred, unc))

    pred_ref, unc_ref = _reference_forward(x, w1, b1, w2, b2, inv_cov)
    assert pred.shape == (N, 1) and unc.shape == (N, 1)
    # f32 everywhere -> tight tolerance; bf16 tanh path (v6e/v7x) -> looser.
    tol = 2e-2 if use_bf16_tanh else 5e-3
    assert jnp.allclose(pred, pred_ref, rtol=tol, atol=tol), (
        float(jnp.max(jnp.abs(pred - pred_ref))))
    assert jnp.allclose(unc, unc_ref, rtol=tol, atol=tol), (
        float(jnp.max(jnp.abs(unc - unc_ref))))

    print("KERNEL_OK")
</pallas_src>

<mosaic_0001>
module attributes {stable_mosaic.version = 11 : i64} {
  func.func @_uncertainty_kernel(%arg0: i32, %arg1: memref<128x16xf32, #tpu.memory_space<vmem>>, %arg2: memref<32x16xf32, #tpu.memory_space<vmem>>, %arg3: memref<32x32xf32, #tpu.memory_space<vmem>>, %arg4: memref<32x8xf32, #tpu.memory_space<vmem>>, %arg5: memref<2xf32, #tpu.memory_space<smem>>, %arg6: memref<1x2x128xf32, #tpu.memory_space<vmem>>) attributes {dimension_semantics = [#tpu.dimension_semantics<parallel>], iteration_bounds = array<i64: 1>, scalar_prefetch = 0 : i64, scratch_operands = 0 : i64, tpu.core_type = #tpu.core_type<tc>, window_params = [{transform_indices = @transform_0, window_bounds = array<i64: 128, 16>}, {pipeline_mode = #tpu.pipeline_mode<synchronous>, transform_indices = @transform_1, window_bounds = array<i64: 32, 16>}, {pipeline_mode = #tpu.pipeline_mode<synchronous>, transform_indices = @transform_2, window_bounds = array<i64: 32, 32>}, {pipeline_mode = #tpu.pipeline_mode<synchronous>, transform_indices = @transform_3, window_bounds = array<i64: 32, 8>}, {transform_indices = @transform_4, window_bounds = array<i64: 2>}, {transform_indices = @transform_5, window_bounds = array<i64: 1, 2, 128>}]} {
    %c0 = arith.constant 0 : index
    %c0_0 = arith.constant 0 : index
    %0 = vector.load %arg1[%c0, %c0_0] : memref<128x16xf32, #tpu.memory_space<vmem>>, vector<128x16xf32>
    %c0_1 = arith.constant 0 : index
    %c0_2 = arith.constant 0 : index
    %1 = vector.load %arg4[%c0_1, %c0_2] : memref<32x8xf32, #tpu.memory_space<vmem>>, vector<32x8xf32>
    %2 = vector.extract_strided_slice %1 {offsets = [0, 0], sizes = [32, 1], strides = [1, 1]} : vector<32x8xf32> to vector<32x1xf32>
    %3 = vector.extract_strided_slice %1 {offsets = [0, 1], sizes = [32, 1], strides = [1, 1]} : vector<32x8xf32> to vector<32x1xf32>
    %4 = vector.extract_strided_slice %1 {offsets = [0, 2], sizes = [32, 1], strides = [1, 1]} : vector<32x8xf32> to vector<32x1xf32>
    %c0_3 = arith.constant 0 : index
    %c0_4 = arith.constant 0 : index
    %5 = vector.load %arg2[%c0_3, %c0_4] : memref<32x16xf32, #tpu.memory_space<vmem>>, vector<32x16xf32>
    %cst = arith.constant dense<0.000000e+00> : vector<32x128xf32>
    %6 = tpu.matmul %5, %0, %cst {dimension_numbers = #tpu.dot_dimension_numbers<[1], [1], [0], [0], [0, 0, 1, 0], [], []>} : vector<32x16xf32>, vector<128x16xf32>, vector<32x128xf32> -> vector<32x128xf32>
    %7 = vector.broadcast %2 : vector<32x1xf32> to vector<32x128xf32>
    %8 = arith.addf %6, %7 : vector<32x128xf32>
    %9 = math.tanh %8 : vector<32x128xf32>
    %c0_5 = arith.constant 0 : index
    %10 = memref.load %arg5[%c0_5] : memref<2xf32, #tpu.memory_space<smem>>
    %c1 = arith.constant 1 : index
    %11 = memref.load %arg5[%c1] : memref<2xf32, #tpu.memory_space<smem>>
    %12 = vector.broadcast %3 : vector<32x1xf32> to vector<32x128xf32>
    %13 = arith.mulf %9, %12 : vector<32x128xf32>
    %cst_6 = arith.constant dense<0.000000e+00> : vector<128xf32>
    %14 = vector.multi_reduction <add>, %13, %cst_6 [0] : vector<32x128xf32> to vector<128xf32>
    %15 = vector.shape_cast %14 : vector<128xf32> to vector<1x128xf32>
    %16 = vector.broadcast %10 : f32 to vector<1x128xf32>
    %17 = arith.addf %15, %16 : vector<1x128xf32>
    %c0_7 = arith.constant 0 : index
    %c0_8 = arith.constant 0 : index
    %18 = vector.load %arg3[%c0_7, %c0_8] : memref<32x32xf32, #tpu.memory_space<vmem>>, vector<32x32xf32>
    %cst_9 = arith.constant dense<0.000000e+00> : vector<32x128xf32>
    %19 = tpu.matmul %18, %9, %cst_9 {dimension_numbers = #tpu.dot_dimension_numbers<[1], [0], [0], [1], [0, 0, 1, 1], [], []>} : vector<32x32xf32>, vector<32x128xf32>, vector<32x128xf32> -> vector<32x128xf32>
    %20 = vector.broadcast %4 : vector<32x1xf32> to vector<32x128xf32>
    %21 = arith.addf %19, %20 : vector<32x128xf32>
    %22 = arith.mulf %9, %21 : vector<32x128xf32>
    %cst_10 = arith.constant dense<0.000000e+00> : vector<128xf32>
    %23 = vector.multi_reduction <add>, %22, %cst_10 [0] : vector<32x128xf32> to vector<128xf32>
    %24 = vector.shape_cast %23 : vector<128xf32> to vector<1x128xf32>
    %25 = vector.broadcast %11 : f32 to vector<1x128xf32>
    %26 = arith.addf %24, %25 : vector<1x128xf32>
    %27 = tpu.concatenate %17, %26 in 0 : vector<1x128xf32>, vector<1x128xf32> -> vector<2x128xf32>
    %28 = vector.shape_cast %27 : vector<2x128xf32> to vector<1x2x128xf32>
    %c0_11 = arith.constant 0 : index
    %c0_12 = arith.constant 0 : index
    %c0_13 = arith.constant 0 : index
    %29 = vector.load %arg6[%c0_11, %c0_12, %c0_13] : memref<1x2x128xf32, #tpu.memory_space<vmem>>, vector<1x2x128xf32>
    tpu.vector_store %arg6[%c0_11, %c0_12, %c0_13], %28 {strides = array<i32>} : memref<1x2x128xf32, #tpu.memory_space<vmem>>, vector<1x2x128xf32>,
    return
  }
  func.func @transform_0(%arg0: i32) -> (i32, i32) {
    %c0_i32 = arith.constant 0 : i32
    %c0_i32_0 = arith.constant 0 : i32
    return %arg0, %c0_i32 : i32, i32
  }
  func.func @transform_1(%arg0: i32) -> (i32, i32) {
    %c0_i32 = arith.constant 0 : i32
    %c0_i32_0 = arith.constant 0 : i32
    %c0_i32_1 = arith.constant 0 : i32
    return %c0_i32, %c0_i32_0 : i32, i32
  }
  func.func @transform_2(%arg0: i32) -> (i32, i32) {
    %c0_i32 = arith.constant 0 : i32
    %c0_i32_0 = arith.constant 0 : i32
    %c0_i32_1 = arith.constant 0 : i32
    return %c0_i32, %c0_i32_0 : i32, i32
  }
  func.func @transform_3(%arg0: i32) -> (i32, i32) {
    %c0_i32 = arith.constant 0 : i32
    %c0_i32_0 = arith.constant 0 : i32
    %c0_i32_1 = arith.constant 0 : i32
    return %c0_i32, %c0_i32_0 : i32, i32
  }
  func.func @transform_4(%arg0: i32) -> i32 {
    %c0_i32 = arith.constant 0 : i32
    %c0_i32_0 = arith.constant 0 : i32
    return %c0_i32 : i32
  }
  func.func @transform_5(%arg0: i32) -> (i32, i32, i32) {
    %c0_i32 = arith.constant 0 : i32
    %c0_i32_0 = arith.constant 0 : i32
    %c0_i32_1 = arith.constant 0 : i32
    return %arg0, %c0_i32, %c0_i32_0 : i32, i32, i32
  }
}

</mosaic_0001>

<bundles_post_ra>
// kernel: uncertainty_forward.1
= control target key start
LH: loop header
LB: loop body
LE: loop exit
PB: predicated region body
PF: predicated region fallthrough
CT: control target
= control target key end

     0   :  { %10 = vsyncpa [#allocation3], 0  ;;  %s704_s0 = inlined_call_operand.vmem [shape: f32[128,16], index: 0, kind: input, shape index: {}]   ;;  %s705_s1 = inlined_call_operand.vmem [shape: f32[32,16], index: 1, kind: input, shape index: {}]   ;;  %s706_s2 = inlined_call_operand.vmem [shape: f32[32,32], index: 2, kind: input, shape index: {}]   ;;  %s707_s3 = inlined_call_operand.vmem [shape: f32[32,8], index: 3, kind: input, shape index: {}]   ;;  %s708_s4 = inlined_call_operand.vmem [shape: f32[2], index: 4, kind: input, shape index: {}]   ;;  %s709_s5 = inlined_call_operand.vmem [shape: f32[1,2,128], index: 5, kind: output, shape index: {}]  }
   0x1   :  { %s25_s20 = sshll.u32 %s708_s4, 4  ;;  %s26_s20 = int_to_ptr.vmem [resolvable:$true] %s25_s20 }
   0x2   :  { %s526_s21 = scalar_lea.vmem %s26_s20, 16  ;;  %p531_p1 = scmp.lt.s32.totalorder %s26_s20, %s26_s20 }
   0x3   :  { %p527_p0 = scmp.ne.s32.totalorder %s26_s20, %s526_s21  ;;  %p532_p2 = scmp.lt.s32.totalorder %s526_s21, %s526_s21 }
   0x5   :  { %p533_p3 = por %p532_p2, %p531_p1 }
   0x7   :  { %p534_p4 = pnand %p533_p3, %p527_p0 }
   0x9   :  { %537 = shalt.err (!%p534_p4)
}
   0xa   :  { %s540_s22 = smov [#allocation2]  }
   0xb   :  { %28 = dma.vmem_to_smem %s26_s20, 16, %s540_s22, [#allocation3]  }
   0xc   :  { %538 = dma.done.wait [#allocation3], 16  }
   0xd   :  { %539 = vsyncadd [#allocation3], 4294967280 }
   0xe   :  { %32 = sfence }
   0xf   :  { %v48_v0 = vld [vmem:[%s704_s0 + $0x78] sm:$0xff]  ;;  %vm77_vm0 = vcmask 130048   ;;  %v47_v1 = vld [vmem:[%s704_s0 + $0x70] sm:$0xff]  ;;  %v541_v2 = vmov 0   ;;  %v46_v3 = vld [vmem:[%s704_s0 + $0x68] sm:$0xff]  ;;  %v542_v11 = vmov 2  }
  0x10   :  { %454 = vmatprep.subr.msk.mxu0 %vm77_vm0, %v48_v0  ;;  %511 = vset.pattern.permute.xlu1 %v541_v2  ;;  %v53_v4 = vld [vmem:[%s705_s1] sm:$0xff]  ;;  %v50_v5 = vld [vmem:[%s707_s3 + $0x8] sm:$0xff]  ;;  %v52_v6 = vld [vmem:[%s707_s3 + $0x18] sm:$0xff]  ;;  %v543_v13 = vmov 1   ;;  %vm280_vm1 = vcmask 261120   ;;  %s421_s23 = sld [smem:[#allocation2 + $0x1]] }
  0x11   :  { %455 = vmatpush3.xpose.msk.msra.mxu0 %vm77_vm0, %v48_v0  ;;  %510 = vset.pattern.permute.xlu0 %v541_v2  ;;  %v45_v7 = vld [vmem:[%s704_s0 + $0x60] sm:$0xff]  ;;  %v51_v9 = vld [vmem:[%s707_s3 + $0x10] sm:$0xff]  ;;  %v44_v10 = vld [vmem:[%s704_s0 + $0x58] sm:$0xff]  ;;  %vm393_vm2 = vcmask 1040384  }
  0x12   :  { %456 = vmatprep.subr.msk.mxu0 %vm77_vm0, %v47_v1  ;;  %486 = vmatprep.mubr.msk.f32.mxu0 %vm77_vm0, %v53_v4  ;;  %v49_v8 = vld [vmem:[%s707_s3] sm:$0xff]  ;;  %v43_v12 = vld [vmem:[%s704_s0 + $0x50] sm:$0xff]  ;;  %v42_v14 = vld [vmem:[%s704_s0 + $0x48] sm:$0xff] }
  0x13   :  { %64 = vperm.xlu1 %511, %v50_v5   ;;  %74 = vperm.xlu0 %510, %v52_v6   ;;  %v41_v15 = vld [vmem:[%s704_s0 + $0x40] sm:$0xff]  ;;  %v40_v16 = vld [vmem:[%s704_s0 + $0x38] sm:$0xff]  ;;  %v39_v17 = vld [vmem:[%s704_s0 + $0x30] sm:$0xff] }
  0x14   :  { %v38_v18 = vld [vmem:[%s704_s0 + $0x28] sm:$0xff]  ;;  %v37_v19 = vld [vmem:[%s704_s0 + $0x20] sm:$0xff]  ;;  %v36_v20 = vld [vmem:[%s704_s0 + $0x18] sm:$0xff] }
  0x15   :  { %457 = vmatpush3.xpose.msk.msra.mxu0 %vm77_vm0, %v47_v1  ;;  %v35_v21 = vld [vmem:[%s704_s0 + $0x10] sm:$0xff]  ;;  %v34_v22 = vld [vmem:[%s704_s0 + $0x8] sm:$0xff]  ;;  %v33_v23 = vld [vmem:[%s704_s0] sm:$0xff] }
  0x16   :  { %458 = vmatprep.subr.msk.mxu0 %vm77_vm0, %v46_v3  ;;  %v54_v24 = vld [vmem:[%s705_s1 + $0x8] sm:$0xff]  ;;  %v55_v25 = vld [vmem:[%s705_s1 + $0x10] sm:$0xff]  ;;  %v56_v26 = vld [vmem:[%s705_s1 + $0x18] sm:$0xff] }
  0x17   :  { %59 = vperm.xlu1 %511, %v49_v8   ;;  %69 = vperm.xlu0 %510, %v51_v9   ;;  %v260_v27 = vld [vmem:[%s706_s2] sm:$0xff]  ;;  %v261_v44 = vld [vmem:[%s706_s2 + $0x8] sm:$0xff]  ;;  %v262_v45 = vld [vmem:[%s706_s2 + $0x10] sm:$0xff] }
  0x18   :  { %500 = vmatprep.mubr.msk.f32.mxu1 %vm280_vm1, %v260_v27  ;;  %v263_v46 = vld [vmem:[%s706_s2 + $0x18] sm:$0xff]  ;;  %s227_s2 = sld [smem:[#allocation2]] }
  0x19   :  { %459 = vmatpush3.xpose.msk.msra.mxu0 %vm77_vm0, %v46_v3 }
  0x1a   :  { %460 = vmatprep.subr.msk.mxu0 %vm77_vm0, %v45_v7 }
  0x1b   :  { %512 = vset.pattern.permute.xlu1 %v542_v11  ;;  %514 = vset.pattern.permute.xlu0 %v543_v13 }
  0x1c   :  { %269 = vperm.xlu1 %512, %v50_v5   ;;  %234 = vperm.xlu0 %514, %v50_v5  }
  0x1d   :  { %461 = vmatpush3.xpose.msk.msra.mxu0 %vm77_vm0, %v45_v7 }
  0x1e   :  { %462 = vmatprep.subr.msk.mxu0 %vm77_vm0, %v44_v10 }
  0x20   :  { %513 = vset.pattern.permute.xlu1 %v543_v13  ;;  %515 = vset.pattern.permute.xlu0 %v542_v11 }
  0x21   :  { %463 = vmatpush3.xpose.msk.msra.mxu0 %vm77_vm0, %v44_v10  ;;  %230 = vperm.xlu1 %513, %v49_v8  }
  0x22   :  { %464 = vmatprep.subr.msk.mxu0 %vm77_vm0, %v43_v12  ;;  %265 = vperm.xlu0 %515, %v49_v8  }
  0x25   :  { %465 = vmatpush3.xpose.msk.msra.mxu0 %vm77_vm0, %v43_v12  ;;  %516 = vset.pattern.permute.xlu1 %v542_v11 }
  0x26   :  { %466 = vmatprep.subr.msk.mxu0 %vm77_vm0, %v42_v14  ;;  %273 = vperm.xlu1 %516, %v51_v9  }
  0x27   :  { %277 = vperm.xlu0 %515, %v52_v6  }
  0x29   :  { %467 = vmatpush3.xpose.msk.msra.mxu0 %vm77_vm0, %v42_v14 }
  0x2a   :  { %468 = vmatprep.subr.msk.mxu0 %vm77_vm0, %v41_v15  ;;  %517 = vset.pattern.permute.xlu1 %v543_v13 }
  0x2b   :  { %238 = vperm.xlu1 %517, %v51_v9  }
  0x2d   :  { %469 = vmatpush3.xpose.msk.msra.mxu0 %vm77_vm0, %v41_v15 }
  0x2e   :  { %470 = vmatprep.subr.msk.mxu0 %vm77_vm0, %v40_v16 }
  0x2f   :  { %242 = vperm.xlu1 %517, %v52_v6  }
  0x31   :  { %471 = vmatpush3.xpose.msk.msra.mxu0 %vm77_vm0, %v40_v16 }
  0x32   :  { %472 = vmatprep.subr.msk.mxu0 %vm77_vm0, %v39_v17 }
  0x35   :  { %473 = vmatpush3.xpose.msk.msra.mxu0 %vm77_vm0, %v39_v17 }
  0x36   :  { %474 = vmatprep.subr.msk.mxu0 %vm77_vm0, %v38_v18 }
  0x39   :  { %475 = vmatpush3.xpose.msk.msra.mxu0 %vm77_vm0, %v38_v18 }
  0x3a   :  { %476 = vmatprep.subr.msk.mxu0 %vm77_vm0, %v37_v19 }
  0x3d   :  { %477 = vmatpush3.xpose.msk.msra.mxu0 %vm77_vm0, %v37_v19 }
  0x3e   :  { %478 = vmatprep.subr.msk.mxu0 %vm77_vm0, %v36_v20 }
  0x41   :  { %479 = vmatpush3.xpose.msk.msra.mxu0 %vm77_vm0, %v36_v20 }
  0x42   :  { %480 = vmatprep.subr.msk.mxu0 %vm77_vm0, %v35_v21 }
  0x45   :  { %481 = vmatpush3.xpose.msk.msra.mxu0 %vm77_vm0, %v35_v21 }
  0x46   :  { %482 = vmatprep.subr.msk.mxu0 %vm77_vm0, %v34_v22 }
  0x49   :  { %483 = vmatpush3.xpose.msk.msra.mxu0 %vm77_vm0, %v34_v22 }
  0x4a   :  { %484 = vmatprep.subr.msk.mxu0 %vm77_vm0, %v33_v23 }
  0x4d   :  { %485 = vmatpush3.xpose.msk.msra.mxu0 %vm77_vm0, %v33_v23 }
  0x50   :  { %487 = vmatmul.mubr.msk.f32.vlgmr.msra.gmra.mxu0 %vm77_vm0, %v54_v24  ;;  %v258_v24 = vstv %s227_s2 }
  0x51   :  { %489 = vmatprep.mubr.msk.f32.mxu0 %vm77_vm0, %v55_v25  ;;  %v391_v25 = vstv %s421_s23 }
  0x54   :  { %490 = vmatmul.mubr.msk.f32.gmra.mxu0 %vm77_vm0, %v56_v26 }
  0x8e   :  { %v75_v28 = vpop.permute.xlu0 %74  ;;  %v65_v30 = vpop.permute.xlu1 %64 }
  0x92   :  { %v70_v34 = vpop.permute.xlu0 %69  ;;  %v60_v38 = vpop.permute.xlu1 %59 }
  0x97   :  { %v270_v47 = vpop.permute.xlu1 %269  ;;  %v235_v50 = vpop.permute.xlu0 %234 }
  0x9c   :  { %v231_v48 = vpop.permute.xlu1 %230 }
  0x9d   :  { %v266_v59 = vpop.permute.xlu0 %265 }
  0xa1   :  { %v274_v49 = vpop.permute.xlu1 %273 }
  0xa2   :  { %v278_v2 = vpop.permute.xlu0 %277 }
  0xa6   :  { %v239_v51 = vpop.permute.xlu1 %238 }
  0xaa   :  { %v243_v56 = vpop.permute.xlu1 %242 }
 0x110   :  { %v488_v29 = vpop.f32.mrf.mxu0 }
 0x111   :  { %v210_v36 = vadd.f32 %v488_v29, %v65_v30 }
 0x112   :  { %v204_v31 = vpop.f32.mrf.mxu0 }
 0x113   :  { %v205_v39 = vadd.f32 %v204_v31, %v60_v38 }
 0x114   :  { %v491_v32 = vpop.f32.mrf.mxu0 }
 0x115   :  { %v220_v33 = vadd.f32 %v491_v32, %v75_v28 }
 0x116   :  { %v214_v35 = vpop.f32.mrf.mxu0 }
 0x117   :  { %518 = vtanh.f32 %v220_v33  ;;  %v215_v37 = vadd.f32 %v214_v35, %v70_v34 }
 0x119   :  { %520 = vtanh.f32 %v215_v37 }
 0x11a   :  { %522 = vtanh.f32 %v210_v36 }
 0x11b   :  { %524 = vtanh.f32 %v205_v39 }
 0x124   :  { %v519_v40 = vpop.eup %518 }
 0x125   :  { %492 = vmatprep.subr.mxu1 %v519_v40  ;;  %v248_v58 = vmul.f32 %v519_v40, %v243_v56 }
 0x126   :  { %v521_v41 = vpop.eup %520  ;;  %493 = vmatpush3.msra.mxu1 %v519_v40 }
 0x127   :  { %494 = vmatprep.subr.mxu1 %v521_v41  ;;  %v523_v42 = vpop.eup %522  ;;  %v247_v54 = vmul.f32 %v521_v41, %v239_v51 }
 0x128   :  { %495 = vmatpush3.msra.mxu1 %v521_v41  ;;  %v525_v43 = vpop.eup %524  ;;  %v246_v53 = vmul.f32 %v523_v42, %v235_v50 }
 0x129   :  { %496 = vmatprep.subr.mxu1 %v523_v42  ;;  %v245_v52 = vmul.f32 %v525_v43, %v231_v48 }
 0x12a   :  { %497 = vmatpush3.msra.mxu1 %v523_v42 }
 0x12b   :  { %498 = vmatprep.subr.mxu1 %v525_v43  ;;  %v249_v55 = vadd.f32 %v246_v53, %v245_v52 }
 0x12c   :  { %499 = vmatpush3.msra.mxu1 %v525_v43 }
 0x12d   :  { %501 = vmatmul.mubr.msk.f32.vlgmr.msra.gmra.mxu1 %vm280_vm1, %v261_v44  ;;  %v250_v57 = vadd.f32 %v249_v55, %v247_v54 }
 0x12e   :  { %503 = vmatprep.mubr.msk.f32.mxu1 %vm280_vm1, %v262_v45 }
 0x12f   :  { %v251_v60 = vadd.f32 %v250_v57, %v248_v58 }
 0x131   :  { %504 = vmatmul.mubr.msk.f32.gmra.mxu1 %vm280_vm1, %v263_v46  ;;  %v252_v63 = vrot.slane %v251_v60, 4 }
 0x133   :  { %v253_v6 = vadd.f32 %v252_v63, %v251_v60 }
 0x135   :  { %v254_v12 = vrot.slane %v253_v6, 2 }
 0x137   :  { %v255_v16 = vadd.f32 %v254_v12, %v253_v6 }
 0x139   :  { %v256_v19 = vrot.slane %v255_v16, 1 }
 0x13b   :  { %v257_v22 = vadd.f32 %v256_v19, %v255_v16 }
 0x13d   :  { %v259_v27 = vadd.f32 %v258_v24, %v257_v22 }
 0x1ed   :  { %v502_v61 = vpop.f32.mrf.mxu1 }
 0x1ee   :  { %v365_v0 = vadd.f32 %v502_v61, %v270_v47 }
 0x1ef   :  { %v359_v62 = vpop.f32.mrf.mxu1 }
 0x1f0   :  { %v360_v1 = vadd.f32 %v359_v62, %v266_v59  ;;  %v379_v7 = vmul.f32 %v523_v42, %v365_v0 }
 0x1f1   :  { %v505_v3 = vpop.f32.mrf.mxu1 }
 0x1f2   :  { %v378_v4 = vmul.f32 %v525_v43, %v360_v1  ;;  %v375_v8 = vadd.f32 %v505_v3, %v278_v2 }
 0x1f3   :  { %v369_v5 = vpop.f32.mrf.mxu1 }
 0x1f4   :  { %v370_v9 = vadd.f32 %v369_v5, %v274_v49  ;;  %v382_v10 = vadd.f32 %v379_v7, %v378_v4  ;;  %v381_v13 = vmul.f32 %v519_v40, %v375_v8 }
 0x1f6   :  { %v380_v11 = vmul.f32 %v521_v41, %v370_v9 }
 0x1f8   :  { %v383_v14 = vadd.f32 %v382_v10, %v380_v11 }
 0x1fa   :  { %v384_v15 = vadd.f32 %v383_v14, %v381_v13 }
 0x1fc   :  { %v385_v17 = vrot.slane %v384_v15, 4 }
 0x1fe   :  { %v386_v18 = vadd.f32 %v385_v17, %v384_v15 }
 0x200   :  { %v387_v20 = vrot.slane %v386_v18, 2 }
 0x202   :  { %v388_v21 = vadd.f32 %v387_v20, %v386_v18 }
 0x204   :  { %v389_v23 = vrot.slane %v388_v21, 1 }
 0x206   :  { %v390_v26 = vadd.f32 %v389_v23, %v388_v21 }
 0x208   :  { %v392_v28 = vadd.f32 %v391_v25, %v390_v26 }
 0x20a   :  { %v394_v29 = vsel %vm393_vm2, %v259_v27, %v392_v28 }
 0x20b   :  { %395 = vst [vmem:[%s709_s5] sm:$0x3] %v394_v29 }
 0x20c   :  { %400 = vsyncpa [#allocation3], 1 }

</bundles_post_ra>
